<compile_context>
chip_gen: v6e
topology: v6e:2x2x1
jax: 0.10.0
libtpu: 0.0.40
codegen_flags: <defaults>
</compile_context>

<pallas_src>
import functools
import jax
import jax.numpy as jnp
from jax.experimental import pallas as pl
from jax.experimental.pallas import tpu as pltpu

NEG_SLOPE = 0.01          # torch default negative_slope for LeakyReLU
LN_EPS = 1e-5             # torch LayerNorm default eps
LANE = 128
ACT_DTYPE = jnp.bfloat16  # inter-kernel activation carry dtype


# ------------------------------- small utils ------------------------------- #

def _pad_to(x, m=LANE):
    return ((x + m - 1) // m) * m


def _hw_plan():
    """Generation-aware tile / scoped-VMEM plan (v5e/v6e vs v7x)."""
    vmem_bytes = None
    try:
        info = pltpu.get_tpu_info()
        vmem_bytes = getattr(info, "vmem_capacity_bytes", None)
    except Exception:
        vmem_bytes = None
    if vmem_bytes is None:
        vmem_bytes = 64 * 1024 * 1024            # assume smallest (v7x per-TC)
    if vmem_bytes >= 96 * 1024 * 1024:           # v5e / v6e: 128 MiB VMEM, 1 TC
        return {"row_tile_max": 2048,
                "vmem_limit": 96 * 1024 * 1024,
                "two_core": False}
    # v7x: 64 MiB per TC, 2 TCs share the grid
    return {"row_tile_max": 1024,
            "vmem_limit": 44 * 1024 * 1024,
            "two_core": True}


_PLAN = _hw_plan()


def _row_tile(n):
    """Rows per grid step: multiple of 8 sublanes, capped per generation.
    On two-TC parts (v7x) keep >= 2 row tiles so both cores get row work."""
    cap = _PLAN["row_tile_max"]
    full = _pad_to(max(n, 1), 8)
    if _PLAN["two_core"] and full > 8:
        return min(cap, _pad_to(-(-n // 2), 8))
    return min(cap, full)


def _plan_sizes(n_nodes, n_nets):
    tm_node = _row_tile(n_nodes)
    tm_net = _row_tile(n_nets)
    return tm_node, tm_net, _pad_to(n_nodes, tm_node), _pad_to(n_nets, tm_net)


def _pad2d(x, rows, cols):
    return jnp.zeros((rows, cols), x.dtype).at[:x.shape[0], :x.shape[1]].set(x)


def _leaky(x, slope):
    return jnp.where(x > 0, x, slope * x)


def _compiler_params(semantics):
    return pltpu.CompilerParams(dimension_semantics=semantics,
                                vmem_limit_bytes=_PLAN["vmem_limit"])


# ----------------------------- Pallas kernels ------------------------------ #

def mlp2_kernel(x_ref, w1_ref, b1_ref, w2_ref, b2_ref, o_ref, *, slope):
    """Fused Linear -> LeakyReLU -> Linear on one row tile (bf16 MXU, f32 VPU)."""
    x = x_ref[...].astype(jnp.bfloat16)
    h = jnp.dot(x, w1_ref[...], preferred_element_type=jnp.float32) + b1_ref[...]
    h = _leaky(h, slope)
    y = jnp.dot(h.astype(jnp.bfloat16), w2_ref[...],
                preferred_element_type=jnp.float32) + b2_ref[...]
    o_ref[...] = y.astype(o_ref.dtype)


def hyperconv_kernel(h_self_ref, a_ref, h_other_ref, w1a_ref, w1b_ref, b1_ref,
                     w2_ref, b2_ref, g_ref, bt_ref, *outs,
                     d_real, slope, eps, emit_raw):
    """Fused DE-HNN message step for one output row tile.

    Grid = (row_tiles, k_tiles).  K (rows of the other table) is the reduction
    axis: the incidence matmul accumulates into a f32 VMEM scratch, and the MLP
    (concat fused via split W1) + LayerNorm + LeakyReLU epilogue runs at the
    last K step only.  All outputs are stored bf16 (lane-dense 128 widths).
    """
    if emit_raw:
        raw_ref, norm_ref, acc_ref = outs
    else:
        norm_ref, acc_ref = outs
        raw_ref = None

    k = pl.program_id(1)

    @pl.when(k == 0)
    def _():
        acc_ref[...] = jnp.zeros_like(acc_ref)

    # bf16 A tile @ bf16 h_other tile -> f32 accumulator (no per-step cast).
    acc_ref[...] += jnp.dot(a_ref[...], h_other_ref[...],
                            preferred_element_type=jnp.float32)

    @pl.when(k == pl.num_programs(1) - 1)
    def _():
        h_self = h_self_ref[...]                     # bf16
        agg = acc_ref[...]                           # f32
        # concat([h_self, agg]) @ W1  ==  h_self @ W1a + agg @ W1b
        h = (jnp.dot(h_self, w1a_ref[...], preferred_element_type=jnp.float32)
             + jnp.dot(agg.astype(jnp.bfloat16), w1b_ref[...],
                       preferred_element_type=jnp.float32)
             + b1_ref[...])
        h = _leaky(h, slope)
        raw = jnp.dot(h.astype(jnp.bfloat16), w2_ref[...],
                      preferred_element_type=jnp.float32) + b2_ref[...]
        if emit_raw:
            raw_ref[...] = raw.astype(raw_ref.dtype)
        # Padded lanes of raw are exactly 0 (zero-padded W2/b2), so LayerNorm
        # stats over the first d_real lanes reduce to plain sums (no iota mask).
        mu = jnp.sum(raw, axis=-1, keepdims=True) / d_real
        ex2 = jnp.sum(raw * raw, axis=-1, keepdims=True) / d_real
        var = jnp.maximum(ex2 - mu * mu, 0.0)
        y = (raw - mu) * jax.lax.rsqrt(var + eps) * g_ref[...] + bt_ref[...]
        norm_ref[...] = _leaky(y, slope).astype(norm_ref.dtype)


# ----------------------------- Pallas wrappers ----------------------------- #

def pallas_mlp2(x, w1, b1, w2, b2, *, tm, out_dtype=jnp.float32,
                slope=NEG_SLOPE):
    rows, din = x.shape
    dh = w1.shape[1]
    dout = w2.shape[1]
    flops = 2 * rows * (din * dh + dh * dout)
    bytes_accessed = int(rows * din * x.dtype.itemsize
                         + rows * dout * jnp.dtype(out_dtype).itemsize
                         + (din * dh + dh * dout) * 2 + (dh + dout) * 4)
    return pl.pallas_call(
        functools.partial(mlp2_kernel, slope=slope),
        out_shape=jax.ShapeDtypeStruct((rows, dout), out_dtype),
        grid=(rows // tm,),
        in_specs=[pl.BlockSpec((tm, din), lambda i: (i, 0)),
                  pl.BlockSpec((din, dh), lambda i: (0, 0)),
                  pl.BlockSpec((1, dh), lambda i: (0, 0)),
                  pl.BlockSpec((dh, dout), lambda i: (0, 0)),
                  pl.BlockSpec((1, dout), lambda i: (0, 0))],
        out_specs=pl.BlockSpec((tm, dout), lambda i: (i, 0)),
        compiler_params=_compiler_params(("parallel",)),
        cost_estimate=pl.CostEstimate(flops=flops, transcendentals=0,
                                      bytes_accessed=bytes_accessed),
    )(x, w1, b1.reshape(1, -1), w2, b2.reshape(1, -1))


def pallas_hyperconv(h_self, a_mat, h_other, mlp, gamma, beta, d_real, *,
                     tm, tk, emit_raw, slope=NEG_SLOPE, eps=LN_EPS):
    """Fused (A @ h_other) aggregation + split-concat MLP + LayerNorm/LeakyReLU.

    Returns (raw, normed) if emit_raw else normed (all bf16, lane-dense).
    """
    w1a, w1b, b1, w2, b2 = mlp
    rows, d = h_self.shape
    kdim = h_other.shape[0]
    n_out = 2 if emit_raw else 1
    k_tiles = kdim // tk

    # Deepen pipelining on the dominant streamed operand when the K loop is
    # long enough to benefit.
    if k_tiles >= 3:
        a_spec = pl.BlockSpec((tm, tk), lambda i, k: (i, k),
                              pipeline_mode=pl.Buffered(3))
    else:
        a_spec = pl.BlockSpec((tm, tk), lambda i, k: (i, k))

    out_spec = pl.BlockSpec((tm, d), lambda i, k: (i, 0))
    out_shape = jax.ShapeDtypeStruct((rows, d), ACT_DTYPE)

    flops = 2 * rows * kdim * d + 3 * 2 * rows * d * d
    bytes_accessed = int(rows * kdim * 2                     # A (bf16)
                         + (rows // tm) * kdim * d * 2       # h_other re-streamed
                         + rows * d * 2                      # h_self
                         + n_out * rows * d * 2              # outputs
                         + 3 * d * d * 2)                    # weights

    res = pl.pallas_call(
        functools.partial(hyperconv_kernel, d_real=d_real, slope=slope,
                          eps=eps, emit_raw=emit_raw),
        out_shape=tuple([out_shape] * n_out),
        grid=(rows // tm, k_tiles),
        in_specs=[pl.BlockSpec((tm, d), lambda i, k: (i, 0)),    # h_self
                  a_spec,                                        # incidence A
                  pl.BlockSpec((tk, d), lambda i, k: (k, 0)),    # h_other
                  pl.BlockSpec((d, d), lambda i, k: (0, 0)),     # W1a
                  pl.BlockSpec((d, d), lambda i, k: (0, 0)),     # W1b
                  pl.BlockSpec((1, d), lambda i, k: (0, 0)),     # b1
                  pl.BlockSpec((d, d), lambda i, k: (0, 0)),     # W2
                  pl.BlockSpec((1, d), lambda i, k: (0, 0)),     # b2
                  pl.BlockSpec((1, d), lambda i, k: (0, 0)),     # gamma
                  pl.BlockSpec((1, d), lambda i, k: (0, 0))],    # beta
        out_specs=tuple([out_spec] * n_out),
        scratch_shapes=[pltpu.VMEM((tm, d), jnp.float32)],
        compiler_params=_compiler_params(("parallel", "arbitrary")),
        cost_estimate=pl.CostEstimate(flops=flops, transcendentals=rows,
                                      bytes_accessed=bytes_accessed),
    )(h_self, a_mat, h_other,
      w1a, w1b, b1.reshape(1, -1), w2, b2.reshape(1, -1),
      gamma.reshape(1, -1), beta.reshape(1, -1))
    if emit_raw:
        return res[0], res[1]
    return res[0]


# -------------------------- incidence construction ------------------------- #

def build_source_incidence(edge_index_source_to_net, n_nodes_p, n_nets_p):
    """Dense padded net<-source incidence, dropout-free: built once per graph.
    Scattered directly into bf16 (no f32 dense HBM intermediate)."""
    src_node, src_net = edge_index_source_to_net[0], edge_index_source_to_net[1]
    ones = jnp.ones((src_node.shape[0],), ACT_DTYPE)
    return jnp.zeros((n_nets_p, n_nodes_p), ACT_DTYPE
                     ).at[src_net, src_node].add(ones)


def build_sink_incidence(edge_index_sink_to_net, edge_weight, keep,
                         n_nodes_p, n_nets_p):
    """Dense padded node<-net incidence with (dropped) sink edge weights."""
    sink_node, sink_net = edge_index_sink_to_net[0], edge_index_sink_to_net[1]
    w = (edge_weight.astype(jnp.float32) * keep).astype(ACT_DTYPE)
    return jnp.zeros((n_nodes_p, n_nets_p), ACT_DTYPE
                     ).at[sink_node, sink_net].add(w)


# ------------------------------- Parameters -------------------------------- #

def init_linear_padded(key, d_in, d_out, scale=0.1, w_dtype=jnp.bfloat16):
    """Linear weights padded (with zeros) to lane-dense multiples of 128."""
    d_in_p, d_out_p = _pad_to(d_in), _pad_to(d_out)
    kw, kb = jax.random.split(key)
    w = jnp.zeros((d_in_p, d_out_p), jnp.float32).at[:d_in, :d_out].set(
        scale * jax.random.normal(kw, (d_in, d_out), jnp.float32))
    b = jnp.zeros((d_out_p,), jnp.float32).at[:d_out].set(
        scale * jax.random.normal(kb, (d_out,), jnp.float32))
    return w.astype(w_dtype), b


def init_params(key, node_dim, net_dim, emb_dim, out_node_dim, out_net_dim,
                num_layer):
    keys = iter(jax.random.split(key, 12 + 6 * num_layer))
    emb_p = _pad_to(emb_dim)
    p = {'emb_dim': emb_dim, 'emb_pad': emb_p,
         'out_node_dim': out_node_dim, 'out_net_dim': out_net_dim}
    # node_encoder / net_encoder: Linear -> LeakyReLU -> Linear
    p['node_enc'] = (*init_linear_padded(next(keys), node_dim, emb_dim),
                     *init_linear_padded(next(keys), emb_dim, emb_dim))
    p['net_enc'] = (*init_linear_padded(next(keys), net_dim, emb_dim),
                    *init_linear_padded(next(keys), emb_dim, emb_dim))
    p['convs'] = []
    p['norms'] = []
    for _ in range(num_layer):
        # psi (net update) / phi (node update).  The [2*emb -> emb] first
        # Linear of each MLP is stored pre-split as (W1a, W1b) with one bias,
        # so concat([h, agg]) never materializes.
        psi_a, psi_b1 = init_linear_padded(next(keys), emb_dim, emb_dim)
        psi_b, _ = init_linear_padded(next(keys), emb_dim, emb_dim)
        psi_w2, psi_b2 = init_linear_padded(next(keys), emb_dim, emb_dim)
        phi_a, phi_b1 = init_linear_padded(next(keys), emb_dim, emb_dim)
        phi_b, _ = init_linear_padded(next(keys), emb_dim, emb_dim)
        phi_w2, phi_b2 = init_linear_padded(next(keys), emb_dim, emb_dim)
        p['convs'].append({'psi': (psi_a, psi_b, psi_b1, psi_w2, psi_b2),
                           'phi': (phi_a, phi_b, phi_b1, phi_w2, phi_b2)})
        # LayerNorm params shared between h_inst and h_net (matches reference:
        # self.norms[layer] is applied to both tensors).
        gamma = jnp.zeros((emb_p,), jnp.float32).at[:emb_dim].set(1.0)
        beta = jnp.zeros((emb_p,), jnp.float32)
        p['norms'].append((gamma, beta))
    p['fc_node'] = (*init_linear_padded(next(keys), emb_dim, 128),
                    *init_linear_padded(next(keys), 128, out_node_dim))
    p['fc_net'] = (*init_linear_padded(next(keys), emb_dim, 64),
                   *init_linear_padded(next(keys), 64, out_net_dim))
    return p


# --------------------------------- Forward --------------------------------- #

def gnn_node_forward(params, node_features, net_features, a_src2net,
                     edge_index_sink_to_net, edge_weight_sink_to_net,
                     num_nets, num_layer, dropout_key, dropout_p=0.2,
                     training=True):
    n_nodes = node_features.shape[0]
    n_nets = num_nets
    emb = params['emb_dim']

    tm_node, tm_net, n_nodes_p, n_nets_p = _plan_sizes(n_nodes, n_nets)
    assert a_src2net.shape == (n_nets_p, n_nodes_p)

    # ---- glue (XLA): edge dropout + dense sink incidence (bf16) ------------ #
    # dropout_edge(p=0.2) on sink->net edges: dropping an edge == zeroing its
    # weight under 'add' aggregation (no 1/(1-p) rescale, like torch_geometric).
    if training:
        keep = jax.random.bernoulli(
            dropout_key, 1.0 - dropout_p,
            (edge_index_sink_to_net.shape[1],)).astype(jnp.float32)
    else:
        keep = jnp.ones((edge_index_sink_to_net.shape[1],), jnp.float32)
    a_net2sink = build_sink_incidence(edge_index_sink_to_net,
                                      edge_weight_sink_to_net, keep,
                                      n_nodes_p, n_nets_p)

    # ---- encoders (outputs carried in bf16) -------------------------------- #
    din_node = params['node_enc'][0].shape[0]
    din_net = params['net_enc'][0].shape[0]
    x_node = _pad2d(node_features.astype(jnp.float32), n_nodes_p, din_node)
    x_net = _pad2d(net_features.astype(jnp.float32), n_nets_p, din_net)
    h_inst = pallas_mlp2(x_node, *params['node_enc'], tm=tm_node,
                         out_dtype=ACT_DTYPE)
    h_net = pallas_mlp2(x_net, *params['net_enc'], tm=tm_net,
                        out_dtype=ACT_DTYPE)

    # ---- DE-HNN message passing (2 fused pallas_calls per layer) ----------- #
    # TODO(synk): HyperConvLayer source is external to the reference file; a
    # DE-HNN-style node->net->node message-passing layer is implemented here.
    for layer in range(num_layer):
        conv = params['convs'][layer]
        gamma, beta = params['norms'][layer]
        # net update (psi): returns the pre-norm tensor (consumed by phi, as in
        # the reference where norm runs after the conv) and the
        # LayerNorm+LeakyReLU tensor carried to the next layer.
        h_net_raw, h_net = pallas_hyperconv(
            h_net, a_src2net, h_inst, conv['psi'], gamma, beta, emb,
            tm=tm_net, tk=tm_node, emit_raw=True)
        # node update (phi) with fused LayerNorm+LeakyReLU epilogue.
        h_inst = pallas_hyperconv(
            h_inst, a_net2sink, h_net_raw, conv['phi'], gamma, beta, emb,
            tm=tm_node, tk=tm_net, emit_raw=False)

    # ---- output heads: fc2(leaky_relu(fc1(.))) ------------------------------ #
    h_inst = pallas_mlp2(h_inst, *params['fc_node'], tm=tm_node,
                         out_dtype=jnp.float32)
    h_net = pallas_mlp2(h_net, *params['fc_net'], tm=tm_net,
                        out_dtype=jnp.float32)
    return (h_inst[:n_nodes, :params['out_node_dim']],
            h_net[:n_nets, :params['out_net_dim']])


# ----------------------------------- Main ----------------------------------- #

if __name__ == "__main__":
    key = jax.random.PRNGKey(0)
    k_param, k_node, k_net, k_src, k_sink, k_w, k_drop = jax.random.split(key, 7)

    # Small shapes consistent with the module
    num_layer = 2
    emb_dim = 32
    node_dim = 8
    net_dim = 8
    out_node_dim = 4
    out_net_dim = 4
    n_nodes = 16
    n_nets = 8
    n_sink_edges = 24

    node_features = jax.random.normal(k_node, (n_nodes, node_dim), jnp.float32)
    net_features = jax.random.normal(k_net, (n_nets, net_dim), jnp.float32)

    # source->net: one driver instance per net
    src_nodes = jax.random.randint(k_src, (n_nets,), 0, n_nodes)
    edge_index_source_to_net = jnp.stack([src_nodes, jnp.arange(n_nets)], axis=0)

    # sink->net edges with weights
    sink_nodes = jax.random.randint(k_sink, (n_sink_edges,), 0, n_nodes)
    sink_nets = jax.random.randint(jax.random.fold_in(k_sink, 1),
                                   (n_sink_edges,), 0, n_nets)
    edge_index_sink_to_net = jnp.stack([sink_nodes, sink_nets], axis=0)
    edge_weight_sink_to_net = jax.random.uniform(k_w, (n_sink_edges,), jnp.float32)

    params = init_params(k_param, node_dim, net_dim, emb_dim,
                         out_node_dim, out_net_dim, num_layer)

    # Dropout-free incidence is built once (hoisted out of the forward).
    _, _, n_nodes_p, n_nets_p = _plan_sizes(n_nodes, n_nets)
    a_src2net = build_source_incidence(edge_index_source_to_net,
                                       n_nodes_p, n_nets_p)

    h_inst, h_net = gnn_node_forward(
        params, node_features, net_features, a_src2net,
        edge_index_sink_to_net, edge_weight_sink_to_net,
        n_nets, num_layer, k_drop)

    jax.block_until_ready((h_inst, h_net))
    assert h_inst.shape == (n_nodes, out_node_dim)
    assert h_net.shape == (n_nets, out_net_dim)
    print("KERNEL_OK")
</pallas_src>

<mosaic_0001>
module attributes {stable_mosaic.version = 11 : i64} {
  func.func @mlp2_kernel(%arg0: i32, %arg1: memref<8x128xf32, #tpu.memory_space<vmem>>, %arg2: memref<128x128xbf16, #tpu.memory_space<vmem>>, %arg3: memref<1x128xf32, #tpu.memory_space<vmem>>, %arg4: memref<128x128xbf16, #tpu.memory_space<vmem>>, %arg5: memref<1x128xf32, #tpu.memory_space<vmem>>, %arg6: memref<8x128xbf16, #tpu.memory_space<vmem>>) attributes {dimension_semantics = [#tpu.dimension_semantics<parallel>], iteration_bounds = array<i64: 2>, scalar_prefetch = 0 : i64, scratch_operands = 0 : i64, tpu.core_type = #tpu.core_type<tc>, window_params = [{transform_indices = @transform_0, window_bounds = array<i64: 8, 128>}, {pipeline_mode = #tpu.pipeline_mode<synchronous>, transform_indices = @transform_1, window_bounds = array<i64: 128, 128>}, {pipeline_mode = #tpu.pipeline_mode<synchronous>, transform_indices = @transform_2, window_bounds = array<i64: 1, 128>}, {pipeline_mode = #tpu.pipeline_mode<synchronous>, transform_indices = @transform_3, window_bounds = array<i64: 128, 128>}, {pipeline_mode = #tpu.pipeline_mode<synchronous>, transform_indices = @transform_4, window_bounds = array<i64: 1, 128>}, {transform_indices = @transform_5, window_bounds = array<i64: 8, 128>}]} {
    %c0 = arith.constant 0 : index
    %c0_0 = arith.constant 0 : index
    %0 = vector.load %arg1[%c0, %c0_0] : memref<8x128xf32, #tpu.memory_space<vmem>>, vector<8x128xf32>
    %1 = arith.truncf %0 : vector<8x128xf32> to vector<8x128xbf16>
    %c0_1 = arith.constant 0 : index
    %c0_2 = arith.constant 0 : index
    %2 = vector.load %arg2[%c0_1, %c0_2] : memref<128x128xbf16, #tpu.memory_space<vmem>>, vector<128x128xbf16>
    %cst = arith.constant dense<0.000000e+00> : vector<8x128xf32>
    %3 = tpu.matmul %1, %2, %cst {dimension_numbers = #tpu.dot_dimension_numbers<[1], [0], [0], [1], [0, 0, 1, 1], [], []>} : vector<8x128xbf16>, vector<128x128xbf16>, vector<8x128xf32> -> vector<8x128xf32>
    %c0_3 = arith.constant 0 : index
    %c0_4 = arith.constant 0 : index
    %4 = vector.load %arg3[%c0_3, %c0_4] : memref<1x128xf32, #tpu.memory_space<vmem>>, vector<1x128xf32>
    %5 = vector.broadcast %4 : vector<1x128xf32> to vector<8x128xf32>
    %6 = arith.addf %3, %5 : vector<8x128xf32>
    %cst_5 = arith.constant 0.000000e+00 : f32
    %7 = vector.broadcast %cst_5 : f32 to vector<8x128xf32>
    %8 = arith.cmpf ogt, %6, %7 : vector<8x128xf32>
    %cst_6 = arith.constant 0.00999999977 : f32
    %9 = vector.broadcast %cst_6 : f32 to vector<8x128xf32>
    %10 = arith.mulf %9, %6 : vector<8x128xf32>
    %11 = arith.select %8, %6, %10 : vector<8x128xi1>, vector<8x128xf32>
    %12 = arith.truncf %11 : vector<8x128xf32> to vector<8x128xbf16>
    %c0_7 = arith.constant 0 : index
    %c0_8 = arith.constant 0 : index
    %13 = vector.load %arg4[%c0_7, %c0_8] : memref<128x128xbf16, #tpu.memory_space<vmem>>, vector<128x128xbf16>
    %cst_9 = arith.constant dense<0.000000e+00> : vector<8x128xf32>
    %14 = tpu.matmul %12, %13, %cst_9 {dimension_numbers = #tpu.dot_dimension_numbers<[1], [0], [0], [1], [0, 0, 1, 1], [], []>} : vector<8x128xbf16>, vector<128x128xbf16>, vector<8x128xf32> -> vector<8x128xf32>
    %c0_10 = arith.constant 0 : index
    %c0_11 = arith.constant 0 : index
    %15 = vector.load %arg5[%c0_10, %c0_11] : memref<1x128xf32, #tpu.memory_space<vmem>>, vector<1x128xf32>
    %16 = vector.broadcast %15 : vector<1x128xf32> to vector<8x128xf32>
    %17 = arith.addf %14, %16 : vector<8x128xf32>
    %18 = arith.truncf %17 : vector<8x128xf32> to vector<8x128xbf16>
    %c0_12 = arith.constant 0 : index
    %c0_13 = arith.constant 0 : index
    %19 = vector.load %arg6[%c0_12, %c0_13] : memref<8x128xbf16, #tpu.memory_space<vmem>>, vector<8x128xbf16>
    tpu.vector_store %arg6[%c0_12, %c0_13], %18 {strides = array<i32>} : memref<8x128xbf16, #tpu.memory_space<vmem>>, vector<8x128xbf16>,
    return
  }
  func.func @transform_0(%arg0: i32) -> (i32, i32) {
    %c0_i32 = arith.constant 0 : i32
    %c0_i32_0 = arith.constant 0 : i32
    return %arg0, %c0_i32 : i32, i32
  }
  func.func @transform_1(%arg0: i32) -> (i32, i32) {
    %c0_i32 = arith.constant 0 : i32
    %c0_i32_0 = arith.constant 0 : i32
    %c0_i32_1 = arith.constant 0 : i32
    return %c0_i32, %c0_i32_0 : i32, i32
  }
  func.func @transform_2(%arg0: i32) -> (i32, i32) {
    %c0_i32 = arith.constant 0 : i32
    %c0_i32_0 = arith.constant 0 : i32
    %c0_i32_1 = arith.constant 0 : i32
    return %c0_i32, %c0_i32_0 : i32, i32
  }
  func.func @transform_3(%arg0: i32) -> (i32, i32) {
    %c0_i32 = arith.constant 0 : i32
    %c0_i32_0 = arith.constant 0 : i32
    %c0_i32_1 = arith.constant 0 : i32
    return %c0_i32, %c0_i32_0 : i32, i32
  }
  func.func @transform_4(%arg0: i32) -> (i32, i32) {
    %c0_i32 = arith.constant 0 : i32
    %c0_i32_0 = arith.constant 0 : i32
    %c0_i32_1 = arith.constant 0 : i32
    return %c0_i32, %c0_i32_0 : i32, i32
  }
  func.func @transform_5(%arg0: i32) -> (i32, i32) {
    %c0_i32 = arith.constant 0 : i32
    %c0_i32_0 = arith.constant 0 : i32
    return %arg0, %c0_i32 : i32, i32
  }
}

</mosaic_0001>

<bundles_post_ra>
// kernel: tpu_custom_call.1
= control target key start
LH: loop header
LB: loop body
LE: loop exit
PB: predicated region body
PF: predicated region fallthrough
CT: control target
= control target key end

     0   :  { %10 = vsyncpa [#allocation3], 0  ;;  %s1157_s0 = inlined_call_operand.hbm [shape: f32[16,128], index: 0, kind: input, shape index: {}]   ;;  %s1158_s1 = inlined_call_operand.hbm [shape: bf16[128,128], index: 1, kind: input, shape index: {}]   ;;  %s1159_s2 = inlined_call_operand.vmem [shape: f32[1,128], index: 2, kind: input, shape index: {}]   ;;  %s1160_s3 = inlined_call_operand.hbm [shape: bf16[128,128], index: 3, kind: input, shape index: {}]   ;;  %s1161_s4 = inlined_call_operand.vmem [shape: f32[1,128], index: 4, kind: input, shape index: {}]   ;;  %s1162_s5 = inlined_call_operand.hbm [shape: bf16[16,128], index: 5, kind: output, shape index: {}]  }
   0x1   :  { %12 = vsyncpa [#allocation3 + $0x1], 0 }
   0x2   :  { %13 = vsyncpa [#allocation6], 0 }
   0x3   :  { %14 = vsyncpa [#allocation4], 0 }
   0x4   :  { %16 = vsyncpa [#allocation4 + $0x1], 0  ;;  %s970_s18 = smov 0   ;;  %s972_s19 = smov 0  }
   0x5   :  { %s974_s20 = smov 0   ;;  %s976_s21 = smov 0  }
   0x6 LB: > { %s991_s22 = sadd.s32 4294967295, %s930_s21   ;;  %s603_s23 = sadd.s32 4294967294, %s930_s21   ;;  %s930_s21 = sphi %s976_s21, %s1184_s21   ;;  %s926_s20 = sphi %s974_s20, %s1183_s20   ;;  %s922_s19 = sphi %s972_s19, %s1182_s19   ;;  %s918_s18 = sphi %s970_s18, %s1181_s18  }
   0x7   : > { %p42_p0 = scmp.ne.s32.totalorder %s922_s19, %s918_s18  ;;  %p1163_p1 = scmp.eq.s32.totalorder %s991_s22, 0 }
   0x8   : > { %p156_p3 = scmp.eq.s32.totalorder %s603_s23, 1  ;;  %p604_p5 = scmp.ge.s32.totalorder %s930_s21, 1 }
   0x9   : > { %p1000_p4 = por %p1163_p1, %p42_p0  ;;  %p163_p7 = scmp.lt.s32.totalorder %s930_s21, 3 }
   0xa   : > { %p1005_p6 = por %p156_p3, %p42_p0  ;;  %s932_s27 = smov [#allocation5]  }
   0xb   : > { %s1167_s24 = scalar_select %p1000_p4, 1, 0 }
   0xc   : > { %s1168_s25 = scalar_select %p1005_p6, 1, 0 }
   0xd   : > { %p1010_p8 = pnand %p604_p5, %p163_p7  ;;  %s175_s28 = sshll.u32 %s932_s27, 4  ;;  %s176_s28 = int_to_ptr.vmem [resolvable:$true] %s175_s28 }
   0xe   : > { %s933_s30 = smov [#allocation7]   ;;  %s793_s7 = scalar_lea.vmem %s176_s28, 1024 }
   0xf   : > { %s1169_s26 = scalar_select %p1010_p8, 1, 0 }
  0x10   : > { %p707_p9 = pneg %p1010_p8  ;;  %s191_s6 = sshll.u32 %s933_s30, 4  ;;  %s192_s6 = int_to_ptr.vmem [resolvable:$true] %s191_s6 }
  0x11   : > { %p794_p13 = scmp.ne.s32.totalorder %s176_s28, %s793_s7  ;;  %p801_p5 = scmp.lt.s32.totalorder %s176_s28, %s176_s28 }
  0x12   : > { %p1019_p11 = pnand %p707_p9, %p1163_p1  ;;  %p802_p7 = scmp.lt.s32.totalorder %s793_s7, %s793_s7 }
  0x14   : > { %p784_p12 = pneg %p1019_p11  ;;  %p803_p10 = por %p802_p7, %p801_p5 }
  0x16   : > { %p796_p0 = pnand %p794_p13, %p784_p12 }
  0x18   : > { %p797_p3 = pneg %p796_p0 }
  0x1a   : > { %p804_p9 = pnand %p803_p10, %p797_p3 }
  0x1c   : > { %807 = shalt.err (!%p804_p9)
}
  0x1d   : > { %s934_s8 = smov 64   ;;  %s935_s9 = smov 4  }
  0x1e   : > { %710 = dma.hbm_to_vmem [thread:$0]  (!%p1019_p11), %s1158_s1, 1024, %s176_s28, [#allocation6], %s934_s8, %s934_s8, %s935_s9  }
  0x1f   : > { %s819_s12 = scalar_lea.vmem %s192_s6, 1024  ;;  %p827_p2 = scmp.lt.s32.totalorder %s192_s6, %s192_s6 }
  0x20   : > { %p820_p1 = scmp.ne.s32.totalorder %s192_s6, %s819_s12  ;;  %p828_p6 = scmp.lt.s32.totalorder %s819_s12, %s819_s12 }
  0x22   : > { %p822_p13 = pnand %p820_p1, %p784_p12  ;;  %p829_p5 = por %p828_p6, %p827_p2 }
  0x24   : > { %p823_p0 = pneg %p822_p13 }
  0x26   : > { %p830_p10 = pnand %p829_p5, %p823_p0 }
  0x28   : > { %833 = shalt.err (!%p830_p10)
}
  0x29   : > { %713 = dma.hbm_to_vmem [thread:$0]  (!%p1019_p11), %s1160_s3, 1024, %s192_s6, [#allocation6], %s934_s8, %s934_s8, %s935_s9  }
  0x2a   : > { %s1042_s15 = sadd.s32 1, %s930_s21   ;;  %s29_s16 = sadd.s32 1, %s926_s20 }
  0x2b   : > { %s26_s17 = ssub.s32 %s930_s21, %s1042_s15  ;;  %p36_p1 = scmp.ne.s32.totalorder %s926_s20, %s922_s19 }
  0x2c   : > { %p27_p2 = scmp.eq.s32.totalorder %s26_s17, 0  ;;  %p37_p6 = scmp.eq.s32.totalorder %s930_s21, 0 }
  0x2d   : > { %p1171_p12 = scmp.eq.s32.totalorder %s991_s22, 1  ;;  %p724_p7 = scmp.lt.s32.totalorder %s930_s21, 2 }
  0x2e   : > { %s1058_s27 = scalar_select %p27_p2, %s926_s20, %s29_s16  }
  0x2f   : > { %p1052_p3 = por %p1171_p12, %p36_p1  ;;  %p38_p9 = por %p37_p6, %p36_p1 }
  0x30   : > { %s208_s28 = sand.u32 1, %s926_s20   ;;  %s609_s30 = sshll.u32 %s930_s21, 7 }
  0x31   : > { %s1172_s23 = scalar_select %p1052_p3, 1, 0 }
  0x32   : > { %s608_s29 = sshll.u32 %s208_s28, 3  ;;  %s1065_s8 = scalar_lea.hbm %s1157_s0, %s609_s30 }
  0x33   : > { %s212_s9 = scalar_lea.vmem [#allocation2], %s608_s29  ;;  %p1067_p11 = pnand %p724_p7, %p38_p9 }
  0x34   : > { %s219_s10 = sshll.u32 %s212_s9, 4  ;;  %s209_s12 = scalar_lea.sflag [#allocation3], %s208_s28  ;;  %s220_s10 = int_to_ptr.vmem [resolvable:$true] %s219_s10 }
  0x35   : > { %s834_s13 = scalar_lea.hbm %s1065_s8, 128  ;;  %p836_p0 = pneg %p1067_p11 }
  0x36   : > { %p835_p13 = scmp.ne.s32.totalorder %s1065_s8, %s834_s13  ;;  %s839_s17 = scalar_lea.hbm %s1157_s0, 256 }
  0x37   : > { %p840_p1 = scmp.lt.s32.totalorder %s1065_s8, %s1157_s0  ;;  %p841_p2 = scmp.lt.s32.totalorder %s839_s17, %s834_s13 }
  0x38   : > { %p837_p5 = pnand %p836_p0, %p835_p13 }
  0x39   : > { %p842_p6 = por %p841_p2, %p840_p1 }
  0x3a   : > { %p838_p10 = pneg %p837_p5 }
  0x3c   : > { %p843_p12 = pnand %p842_p6, %p838_p10 }
  0x3e   : > { %846 = shalt.err (!%p843_p12)
}
  0x3f   : > { %s847_s6 = scalar_lea.vmem %s220_s10, 128  ;;  %s936_s28 = smov [#allocation2]  }
  0x40   : > { %p848_p7 = scmp.ne.s32.totalorder %s220_s10, %s847_s6  ;;  %s852_s7 = sshll.u32 %s936_s28, 4  ;;  %s853_s7 = int_to_ptr.vmem [resolvable:$false] %s852_s7 }
  0x41   : > { %s854_s9 = scalar_lea.vmem %s853_s7, 256  ;;  %p855_p13 = scmp.lt.s32.totalorder %s220_s10, %s853_s7 }
  0x42   : > { %p850_p9 = pnand %p848_p7, %p836_p0  ;;  %p856_p5 = scmp.lt.s32.totalorder %s854_s9, %s847_s6 }
  0x44   : > { %p851_p3 = pneg %p850_p9  ;;  %p857_p4 = por %p856_p5, %p855_p13 }
  0x46   : > { %p858_p8 = pnand %p857_p4, %p851_p3 }
  0x48   : > { %861 = shalt.err (!%p858_p8)
}
  0x49   : > { %717 = dma.hbm_to_vmem [thread:$0]  (!%p1067_p11), %s1065_s8, 128, %s220_s10, %s209_s12  }
  0x4a   : > { %p1174_p10 = scmp.ne.s32.totalorder %s1169_s26, 0 }
  0x4b   : > { %s1088_s13 = sand.u32 (!%p1174_p10), 1, %s922_s19   ;;  %p1175_p0 = scmp.ne.s32.totalorder (!%p1174_p10), %s1167_s24, 0 }
  0x4c   : > { %228 = sbr.rel (%p1174_p10) target bundleno = 530 (0x212), region = 40  ;;  %s611_s14 = sshll.u32 (!%p1174_p10), %s1088_s13, 3 }
  0x4d   : > { %s231_s16 = scalar_lea.sflag (!%p1174_p10), [#allocation3], %s1088_s13  ;;  %s1092_s17 = scalar_lea.vmem (!%p1174_p10), [#allocation2], %s611_s14 }
  0x51   : > { %905 = dma.done.wait (%p1175_p0), %s231_s16, 128  }
  0x52   : > { %907 = vsyncadd (%p1175_p0), %s231_s16, 4294967168  ;;  %p1176_p4 = scmp.eq.s32.totalorder %s991_s22, 0 }
  0x54   : > { %909 = dma.done.wait (%p1176_p4), [#allocation6], 2048   ;;  %p1177_p8 = pmov %p1176_p4 }
  0x55   : > { %v937_v0 = vmov 0.0   ;;  %vm938_vm0 = vmmov 0   ;;  %v766_v1 = vld [vmem:[#allocation5 + $0x38] sm:$0xff]   ;;  %v767_v2 = vld [vmem:[#allocation5 + $0x30] sm:$0xff]   ;;  %v768_v3 = vld [vmem:[#allocation5 + $0x28] sm:$0xff]   ;;  %s614_s8 = sshll.u32 %s1088_s13, 2 }
  0x56   : > { %911 = vsyncadd (%p1177_p8), [#allocation6], 4294965248  ;;  %655 = vmatprep.subr.bf16.mxu0 %v937_v0  ;;  %671 = vmatprep.mubr.msk.bf16.mxu0 %vm938_vm0, %v937_v0  ;;  %v774_v4 = vld [vmem:[#allocation7 + $0x38] sm:$0xff]   ;;  %v769_v5 = vld [vmem:[#allocation5 + $0x20] sm:$0xff]   ;;  %s634_s12 = sshll.u32 %s991_s22, 6  ;;  %s268_s30 = scalar_lea.vmem [#allocation8], %s614_s8 }
  0x57   : > { %675 = vmatprep.subr.bf16.mxu1 %v937_v0  ;;  %691 = vmatprep.mubr.msk.bf16.mxu1 %vm938_vm0, %v937_v0  ;;  %v775_v6 = vld [vmem:[#allocation7 + $0x30] sm:$0xff]   ;;  %v770_v7 = vld [vmem:[#allocation5 + $0x18] sm:$0xff]   ;;  %v776_v8 = vld [vmem:[#allocation7 + $0x28] sm:$0xff]   ;;  %s514_s29 = sshll.u32 %s268_s30, 4  ;;  %s1114_s7 = scalar_lea.hbm %s1162_s5, %s634_s12  ;;  %s1116_s29 = int_to_ptr.vmem [resolvable:$true] %s514_s29 }
  0x58   : > { %656 = vmatpush3.bf16.msra.mxu0 %v766_v1  ;;  %676 = vmatpush3.bf16.msra.mxu1 %v774_v4  ;;  %v771_v9 = vld [vmem:[#allocation5 + $0x10] sm:$0xff]   ;;  %v777_v10 = vld [vmem:[#allocation7 + $0x20] sm:$0xff]   ;;  %v772_v11 = vld [vmem:[#allocation5 + $0x8] sm:$0xff]   ;;  %s501_s9 = scalar_lea.sflag [#allocation4], %s1088_s13  ;;  %s862_s22 = scalar_lea.vmem %s1116_s29, 64 }
  0x59   : > { %657 = vmatprep.subr.bf16.mxu0 %v937_v0  ;;  %677 = vmatprep.subr.bf16.mxu1 %v937_v0  ;;  %v778_v12 = vld [vmem:[#allocation7 + $0x18] sm:$0xff]   ;;  %v773_v13 = vld [vmem:[#allocation5] sm:$0xff]   ;;  %v779_v15 = vld [vmem:[#allocation7 + $0x10] sm:$0xff]   ;;  %p863_p3 = scmp.ne.s32.totalorder %s1116_s29, %s862_s22  ;;  %p1178_p11 = scmp.ne.s32.totalorder %s1172_s23, 0 }
  0x5a   : > { %v270_v14 = vld [vmem:[%s1092_s17] sm:$0xff]  ;;  %v780_v17 = vld [vmem:[#allocation7 + $0x8] sm:$0xff]   ;;  %v781_v18 = vld [vmem:[#allocation7] sm:$0xff]   ;;  %s939_s14 = smov [#allocation8]  }
  0x5b   : > { %v271_v16 = vpack.c.bf16 %v270_v14, %v270_v14  ;;  %v615_v19 = vld [vmem:[%s1159_s2] ss:$0 sm:$0xff]  ;;  %p864_p1 = pnand %p863_p3, %p1178_p11  ;;  %s866_s16 = sshll.u32 %s939_s14, 4  ;;  %s867_s16 = int_to_ptr.vmem [resolvable:$false] %s866_s16 }
  0x5c   : > { %658 = vmatpush3.bf16.msra.mxu0 %v767_v2  ;;  %678 = vmatpush3.bf16.msra.mxu1 %v775_v6  ;;  %v624_v28 = vld [vmem:[%s1161_s4] ss:$0 sm:$0xff]  ;;  %s868_s17 = scalar_lea.vmem %s867_s16, 128  ;;  %p869_p6 = scmp.lt.s32.totalorder %s1116_s29, %s867_s16 }
  0x5d   : > { %659 = vmatprep.subr.bf16.mxu0 %v937_v0  ;;  %679 = vmatprep.subr.bf16.mxu1 %v937_v0  ;;  %p865_p2 = pneg %p864_p1  ;;  %p870_p12 = scmp.lt.s32.totalorder %s868_s17, %s862_s22 }
  0x5f   : > { %p871_p7 = por %p870_p12, %p869_p6 }
  0x60   : > { %660 = vmatpush3.bf16.msra.mxu0 %v768_v3  ;;  %680 = vmatpush3.bf16.msra.mxu1 %v776_v8 }
  0x61   : > { %661 = vmatprep.subr.bf16.mxu0 %v937_v0  ;;  %681 = vmatprep.subr.bf16.mxu1 %v937_v0  ;;  %p872_p9 = pnand %p871_p7, %p865_p2 }
  0x64   : > { %662 = vmatpush3.bf16.msra.mxu0 %v769_v5  ;;  %682 = vmatpush3.bf16.msra.mxu1 %v777_v10 }
  0x65   : > { %663 = vmatprep.subr.bf16.mxu0 %v937_v0  ;;  %683 = vmatprep.subr.bf16.mxu1 %v937_v0 }
  0x68   : > { %664 = vmatpush3.bf16.msra.mxu0 %v770_v7  ;;  %684 = vmatpush3.bf16.msra.mxu1 %v778_v12 }
  0x69   : > { %665 = vmatprep.subr.bf16.mxu0 %v937_v0  ;;  %685 = vmatprep.subr.bf16.mxu1 %v937_v0 }
  0x6c   : > { %666 = vmatpush3.bf16.msra.mxu0 %v771_v9  ;;  %686 = vmatpush3.bf16.msra.mxu1 %v779_v15 }
  0x6d   : > { %667 = vmatprep.subr.bf16.mxu0 %v937_v0  ;;  %687 = vmatprep.subr.bf16.mxu1 %v937_v0 }
  0x70   : > { %668 = vmatpush3.bf16.msra.mxu0 %v772_v11  ;;  %688 = vmatpush3.bf16.msra.mxu1 %v780_v17 }
  0x71   : > { %669 = vmatprep.subr.bf16.mxu0 %v937_v0  ;;  %689 = vmatprep.subr.bf16.mxu1 %v937_v0 }
  0x74   : > { %670 = vmatpush3.bf16.msra.mxu0 %v773_v13  ;;  %690 = vmatpush3.bf16.msra.mxu1 %v781_v18 }
  0x77   : > { %672 = vmatmul.mubr.bf16.vlgmr.msra.gmra.mxu0 %v271_v16 }
 0x137   : > { %v377_v20 = vpop.f32.mrf.mxu0 }
 0x138   : > { %v378_v21 = vadd.f32 %v615_v19, %v377_v20 }
 0x139   : > { %v673_v22 = vpop.f32.mrf.mxu0 }
 0x13a   : > { %vm383_vm1 = vcmp.gt.f32.partialorder %v378_v21, 0.0  ;;  %v384_v23 = vmul.f32 0.01, %v378_v21 }
 0x13b   : > { %v380_v24 = vpop.f32.mrf.mxu0 }
 0x13c   : > { %v385_v25 = vsel %vm383_vm1, %v378_v21, %v384_v23 }
 0x13d   : > { %v674_v26 = vpop.f32.mrf.mxu0  ;;  %v386_v27 = vpack.c.bf16 %v385_v25, %v385_v25 }
 0x13f   : > { %692 = vmatmul.mubr.bf16.vlgmr.msra.gmra.mxu1 %v386_v27 }
 0x1ff   : > { %v492_v29 = vpop.f32.mrf.mxu1 }
 0x200   : > { %v493_v30 = vadd.f32 %v624_v28, %v492_v29 }
 0x201   : > { %v693_v31 = vpop.f32.mrf.mxu1 }
 0x202   : > { %v498_v32 = vpack.c.bf16 %v493_v30, %v493_v30 }
 0x203   : > { %v495_v33 = vpop.f32.mrf.mxu1 }
 0x204   : > { %499 = vst [vmem:[%s268_s30] sm:$0xf] %v498_v32 }
 0x205   : > { %v694_v34 = vpop.f32.mrf.mxu1 }
 0x206   : > { %875 = shalt.err (!%p872_p9)
}
 0x207   : > { %s876_s24 = scalar_lea.hbm %s1114_s7, 64  ;;  %s880_s8 = scalar_lea.hbm %s1162_s5, 128 }
 0x208   : > { %p877_p13 = scmp.ne.s32.totalorder %s1114_s7, %s876_s24  ;;  %p881_p0 = scmp.lt.s32.totalorder %s1114_s7, %s1162_s5 }
 0x209   : > { %p882_p4 = scmp.lt.s32.totalorder %s880_s8, %s876_s24 }
 0x20a   : > { %p878_p5 = pnand %p877_p13, %p1178_p11 }
 0x20b   : > { %p883_p8 = por %p882_p4, %p881_p0 }
 0x20c   : > { %p879_p10 = pneg %p878_p5 }
 0x20e   : > { %p884_p3 = pnand %p883_p8, %p879_p10 }
 0x210   : > { %887 = shalt.err (!%p884_p3)
}
 0x211   : > { %705 = dma.vmem_to_hbm [thread:$0]  (%p1178_p11), %s1116_s29, 64, %s1114_s7, %s501_s9  }
 0x212 PF: > { %s526_s12 = sand.u32 1, %s918_s18   ;;  %p1179_p1 = scmp.ne.s32.totalorder %s1168_s25, 0 }
 0x213   : > { %p1180_p2 = scmp.ge.s32.totalorder %s930_s21, 2  ;;  %s527_s30 = scalar_lea.sflag [#allocation4], %s526_s12 }
 0x215   : > { %p719_p6 = pnand %p1180_p2, %p1179_p1 }
 0x217   : > { %p720_p12 = pneg %p719_p6 }
 0x219   : > { %913 = dma.done.wait (%p720_p12), %s527_s30, 64  }
 0x21a   : > { %915 = vsyncadd (%p720_p12), %s527_s30, 4294967232  ;;  %p19_p7 = scmp.ge.s32.totalorder %s1042_s15, 4   ;;  %s1181_s18 = smov %s922_s19 }
 0x21b   : > { %s1182_s19 = smov %s926_s20  ;;  %s1183_s20 = smov %s1058_s27 }
 0x21c   : > { %s1184_s21 = smov %s1042_s15  ;;  %21 = sbr.rel (!%p19_p7) target bundleno = 6 (0x6), region = 93 }
 0x221   :  { %532 = vsyncpa [#allocation3], 1 }
 0x222   :  { %534 = vsyncpa [#allocation3 + $0x1], 1 }
 0x223   :  { %535 = vsyncpa [#allocation6], 1 }
 0x224   :  { %536 = vsyncpa [#allocation4], 1 }
 0x225   :  { %538 = vsyncpa [#allocation4 + $0x1], 1 }

</bundles_post_ra>
